<compile_context>
chip_gen: v7x
topology: tpu7x:2x2x1
jax: 0.10.0
libtpu: 0.0.40
codegen_flags: <defaults>
</compile_context>

<pallas_src>
import functools

import jax
import jax.numpy as jnp
from jax.experimental import pallas as pl
from jax.experimental.pallas import tpu as pltpu


def _round_up(x: int, m: int) -> int:
    return ((x + m - 1) // m) * m


def _pick_tile(total: int, cap: int, step: int) -> int:
    """Largest multiple of `step` dividing `total` that is <= max(cap, step).

    `total` must itself be a multiple of `step` (we pad to guarantee this)."""
    cap = max(step, min(cap, total))
    t = (cap // step) * step
    while total % t:
        t -= step
    return t


# ---------------------------------------------------------------------------
# Kernel body.  Grid = (m_tiles, n_tiles, k_tiles); k (reduction) is innermost.
# The output block index is (i, j) -- constant across k -- so it stays resident
# in VMEM and we accumulate into it directly (no scratch, no flush copy).
# ---------------------------------------------------------------------------
def _complex_linear_kernel(xr_ref, xi_ref, wt_ref, wb_ref, o_ref):
    k = pl.program_id(2)

    part = jnp.dot(xr_ref[...], wt_ref[...], preferred_element_type=jnp.float32)
    part = part + jnp.dot(xi_ref[...], wb_ref[...], preferred_element_type=jnp.float32)

    @pl.when(k == 0)
    def _init():
        o_ref[...] = part

    @pl.when(k > 0)
    def _accumulate():
        o_ref[...] += part


# ---------------------------------------------------------------------------
# Weight fusion (hoist this out of the per-call path for repeated inference).
# ---------------------------------------------------------------------------
def fuse_complex_linear_weights(w_a, w_b, compute_dtype=jnp.bfloat16):
    """w_a, w_b: PyTorch-layout [out, in] real weights.

    Returns (w_top, w_bot), each (Kp, 2*Np) with Kp = round_up(in, 128) and
    Np = round_up(out, 128), zero padded so every kernel block is lane-dense:
        w_top = [ A^T |  B^T ]      w_bot = [ -B^T | A^T ]
    and  [Re | Im] = Re(z) @ w_top + Im(z) @ w_bot  (zero padding is inert).
    """
    n_out, k_in = w_a.shape
    assert w_b.shape == (n_out, k_in)
    kp = _round_up(k_in, 128)
    np_ = _round_up(n_out, 128)

    a_t = w_a.astype(jnp.float32).T  # (K, N)
    b_t = w_b.astype(jnp.float32).T  # (K, N)

    def _pad(w):
        return jnp.pad(w, ((0, kp - k_in), (0, np_ - n_out)))

    w_top = jnp.concatenate([_pad(a_t), _pad(b_t)], axis=1).astype(compute_dtype)
    w_bot = jnp.concatenate([_pad(-b_t), _pad(a_t)], axis=1).astype(compute_dtype)
    return w_top, w_bot


# ---------------------------------------------------------------------------
# Forward pass with pre-fused weights (preferred inference entry point).
# ---------------------------------------------------------------------------
def complex_linear_fused(z, w_top, w_bot, *, out_features, tm=512, tn_cap=1024,
                         min_pallas_flops=1 << 24):
    *lead, k_in = z.shape
    kp, n2p = w_top.shape
    assert w_bot.shape == (kp, n2p), "fused weight shape mismatch"
    np_ = n2p // 2
    n_out = out_features
    assert kp == _round_up(k_in, 128) and np_ >= n_out, "fused weights don't match z"

    compute_dtype = w_top.dtype
    itemsize = jnp.dtype(compute_dtype).itemsize

    m = 1
    for d in lead:
        m *= d
    m = max(m, 1)

    xr = jnp.real(z).reshape(m, k_in).astype(compute_dtype)
    xi = jnp.imag(z).reshape(m, k_in).astype(compute_dtype)

    # Small-shape fallback: pallas_call fixed overhead dominates tiny problems.
    if 4 * m * k_in * n_out < min_pallas_flops:
        out = (jnp.dot(xr, w_top[:k_in], preferred_element_type=jnp.float32)
               + jnp.dot(xi, w_bot[:k_in], preferred_element_type=jnp.float32))
        out_r = out[:, :n_out]
        out_i = out[:, np_:np_ + n_out]
        return jax.lax.complex(out_r, out_i).reshape(*lead, n_out)

    # --- tiling --------------------------------------------------------------
    row_align = 16 if itemsize < 4 else 8            # bf16 packs 16 sublanes/vreg
    tm_eff = min(_round_up(tm, row_align), _round_up(m, row_align))
    mp = _round_up(m, tm_eff)
    grid_m = mp // tm_eff

    tk = _pick_tile(kp, 2048 if itemsize < 4 else 1024, 128)   # dtype-aware K cap
    grid_k = kp // tk

    tn = _pick_tile(n2p, tn_cap, 128)
    grid_n = n2p // tn

    # v7x has 2 TensorCores: expose >= 2 parallel grid steps when M allows.
    if grid_m == 1 and grid_n == 1 and tm_eff > row_align:
        tm_eff = _round_up(-(-m // 2), row_align)
        mp = _round_up(m, tm_eff)
        grid_m = mp // tm_eff

    if mp != m or kp != k_in:
        xr = jnp.pad(xr, ((0, mp - m), (0, kp - k_in)))
        xi = jnp.pad(xi, ((0, mp - m), (0, kp - k_in)))

    # --- VMEM budget: actual double-buffered block bytes + headroom -----------
    # (2 activation inputs + 2 weight inputs, 2 buffers each, f32 output block.)
    # NOTE: when grid_k == grid_n == 1 the weight block index is constant, so a
    # single weight buffer would suffice; we keep the default buffering for
    # compile robustness -- the N-tiled blocks are already small.
    need = (2 * 2 * tm_eff * tk * itemsize
            + 2 * 2 * tk * tn * itemsize
            + 2 * tm_eff * tn * 4)
    vmem_limit = int(min(56 * 2 ** 20, max(32 * 2 ** 20, need + need // 2)))

    # --- CostEstimate: count re-streamed traffic ------------------------------
    flops = 4 * mp * kp * n2p                                   # two dots per tile
    act_bytes = grid_n * 2 * mp * kp * itemsize                 # re-read per N tile
    wgt_refetch = grid_m if (grid_k > 1 or grid_n > 1) else 1   # re-read per M tile
    wgt_bytes = wgt_refetch * 2 * kp * n2p * itemsize
    out_bytes = mp * n2p * 4
    cost = pl.CostEstimate(flops=flops, transcendentals=0,
                           bytes_accessed=act_bytes + wgt_bytes + out_bytes)

    grid_spec = pltpu.PrefetchScalarGridSpec(
        num_scalar_prefetch=0,
        grid=(grid_m, grid_n, grid_k),
        in_specs=[
            pl.BlockSpec((tm_eff, tk), lambda i, j, k: (i, k)),   # Re(z)
            pl.BlockSpec((tm_eff, tk), lambda i, j, k: (i, k)),   # Im(z)
            pl.BlockSpec((tk, tn), lambda i, j, k: (k, j)),       # W_top
            pl.BlockSpec((tk, tn), lambda i, j, k: (k, j)),       # W_bot
        ],
        out_specs=pl.BlockSpec((tm_eff, tn), lambda i, j, k: (i, j)),
    )

    out = pl.pallas_call(
        _complex_linear_kernel,
        out_shape=jax.ShapeDtypeStruct((mp, n2p), jnp.float32),
        grid_spec=grid_spec,
        compiler_params=pltpu.CompilerParams(
            dimension_semantics=("parallel", "parallel", "arbitrary"),
            vmem_limit_bytes=vmem_limit,
        ),
        cost_estimate=cost,
    )(xr, xi, w_top, w_bot)

    out_r = out[:m, :n_out]
    out_i = out[:m, np_:np_ + n_out]
    return jax.lax.complex(out_r, out_i).reshape(*lead, n_out)


def complex_linear(z, w_a, w_b, *, compute_dtype=jnp.bfloat16, tm=512,
                   min_pallas_flops=1 << 24):
    """One-shot convenience wrapper (re-fuses the weights every call).

    For repeated inference, hoist fuse_complex_linear_weights() out of the hot
    path and call complex_linear_fused directly."""
    w_top, w_bot = fuse_complex_linear_weights(w_a, w_b, compute_dtype)
    return complex_linear_fused(z, w_top, w_bot, out_features=w_a.shape[0],
                                tm=tm, min_pallas_flops=min_pallas_flops)


def _reference(z, w_a, w_b):
    x = jnp.real(z)
    y = jnp.imag(z)
    X = x @ w_a.T - y @ w_b.T
    Y = y @ w_a.T + x @ w_b.T
    return jax.lax.complex(X, Y)


if __name__ == "__main__":
    key = jax.random.PRNGKey(0)
    k1, k2, k3, k4 = jax.random.split(key, 4)

    batch, seq, in_features, out_features = 2, 8, 32, 16

    # Deterministic synthetic parameters (PyTorch nn.Linear weight layout [out, in]).
    bound = 1.0 / (in_features ** 0.5)
    w_a = jax.random.uniform(k1, (out_features, in_features),
                             minval=-bound, maxval=bound, dtype=jnp.float32)
    w_b = jax.random.uniform(k2, (out_features, in_features),
                             minval=-bound, maxval=bound, dtype=jnp.float32)

    # Complex input z of shape (batch, seq, in_features).
    zr = jax.random.normal(k3, (batch, seq, in_features), dtype=jnp.float32)
    zi = jax.random.normal(k4, (batch, seq, in_features), dtype=jnp.float32)
    z = jax.lax.complex(zr, zi)

    ref = _reference(z, w_a, w_b)

    # Hoisted weight fusion (done ONCE per parameter set).
    wt_f32, wb_f32 = fuse_complex_linear_weights(w_a, w_b, jnp.float32)
    wt_bf16, wb_bf16 = fuse_complex_linear_weights(w_a, w_b, jnp.bfloat16)

    # Force the Pallas path (min_pallas_flops=0) to validate the kernel itself.
    run_fused = jax.jit(functools.partial(
        complex_linear_fused, out_features=out_features, min_pallas_flops=0))

    # Exact path: f32 operands, f32 accumulation directly into the output block.
    out_f32 = jax.block_until_ready(run_fused(z, wt_f32, wb_f32))
    assert out_f32.shape == (batch, seq, out_features)
    assert out_f32.dtype == jnp.complex64
    assert jnp.allclose(out_f32, ref, atol=2e-4, rtol=2e-4)

    # Perf path: bf16 operands on the MXU, f32 accumulation.
    out_bf16 = jax.block_until_ready(run_fused(z, wt_bf16, wb_bf16))
    assert out_bf16.shape == (batch, seq, out_features)
    assert out_bf16.dtype == jnp.complex64
    assert jnp.allclose(out_bf16, ref, atol=5e-2, rtol=5e-2)

    # Convenience wrapper: these shapes are below the flop threshold, so this
    # exercises the small-shape XLA fallback path.
    out_fb = jax.block_until_ready(
        jax.jit(functools.partial(complex_linear, compute_dtype=jnp.float32))(
            z, w_a, w_b))
    assert out_fb.shape == (batch, seq, out_features)
    assert jnp.allclose(out_fb, ref, atol=2e-4, rtol=2e-4)

    print("KERNEL_OK")
</pallas_src>

<mosaic_0001>
module attributes {stable_mosaic.version = 11 : i64} {
  func.func @_complex_linear_kernel(%arg0: i32, %arg1: i32, %arg2: i32, %arg3: memref<8x128xf32, #tpu.memory_space<vmem>>, %arg4: memref<8x128xf32, #tpu.memory_space<vmem>>, %arg5: memref<128x256xf32, #tpu.memory_space<vmem>>, %arg6: memref<128x256xf32, #tpu.memory_space<vmem>>, %arg7: memref<8x256xf32, #tpu.memory_space<vmem>>) attributes {dimension_semantics = [#tpu.dimension_semantics<parallel>, #tpu.dimension_semantics<parallel>, #tpu.dimension_semantics<arbitrary>], iteration_bounds = array<i64: 2, 1, 1>, scalar_prefetch = 0 : i64, scratch_operands = 0 : i64, tpu.core_type = #tpu.core_type<tc>, window_params = [{transform_indices = @transform_0, window_bounds = array<i64: 8, 128>}, {transform_indices = @transform_1, window_bounds = array<i64: 8, 128>}, {transform_indices = @transform_2, window_bounds = array<i64: 128, 256>}, {transform_indices = @transform_3, window_bounds = array<i64: 128, 256>}, {transform_indices = @transform_4, window_bounds = array<i64: 8, 256>}]} {
    %c0 = arith.constant 0 : index
    %c0_0 = arith.constant 0 : index
    %0 = vector.load %arg3[%c0, %c0_0] : memref<8x128xf32, #tpu.memory_space<vmem>>, vector<8x128xf32>
    %c0_1 = arith.constant 0 : index
    %c0_2 = arith.constant 0 : index
    %1 = vector.load %arg5[%c0_1, %c0_2] : memref<128x256xf32, #tpu.memory_space<vmem>>, vector<128x256xf32>
    %cst = arith.constant dense<0.000000e+00> : vector<8x256xf32>
    %2 = tpu.matmul %0, %1, %cst {dimension_numbers = #tpu.dot_dimension_numbers<[1], [0], [0], [1], [0, 0, 1, 1], [], []>} : vector<8x128xf32>, vector<128x256xf32>, vector<8x256xf32> -> vector<8x256xf32>
    %c0_3 = arith.constant 0 : index
    %c0_4 = arith.constant 0 : index
    %3 = vector.load %arg4[%c0_3, %c0_4] : memref<8x128xf32, #tpu.memory_space<vmem>>, vector<8x128xf32>
    %c0_5 = arith.constant 0 : index
    %c0_6 = arith.constant 0 : index
    %4 = vector.load %arg6[%c0_5, %c0_6] : memref<128x256xf32, #tpu.memory_space<vmem>>, vector<128x256xf32>
    %cst_7 = arith.constant dense<0.000000e+00> : vector<8x256xf32>
    %5 = tpu.matmul %3, %4, %cst_7 {dimension_numbers = #tpu.dot_dimension_numbers<[1], [0], [0], [1], [0, 0, 1, 1], [], []>} : vector<8x128xf32>, vector<128x256xf32>, vector<8x256xf32> -> vector<8x256xf32>
    %6 = arith.addf %2, %5 : vector<8x256xf32>
    %c0_i32 = arith.constant 0 : i32
    %7 = arith.cmpi eq, %arg2, %c0_i32 : i32
    %8 = arith.extui %7 : i1 to i32
    %c0_i32_8 = arith.constant 0 : i32
    %9 = arith.cmpi ne, %8, %c0_i32_8 : i32
    scf.if %9 {
      %c0_11 = arith.constant 0 : index
      %c0_12 = arith.constant 0 : index
      %13 = vector.load %arg7[%c0_11, %c0_12] : memref<8x256xf32, #tpu.memory_space<vmem>>, vector<8x256xf32>
      tpu.vector_store %arg7[%c0_11, %c0_12], %6 {strides = array<i32>} : memref<8x256xf32, #tpu.memory_space<vmem>>, vector<8x256xf32>,
    } else {
    }
    %c0_i32_9 = arith.constant 0 : i32
    %10 = arith.cmpi sgt, %arg2, %c0_i32_9 : i32
    %11 = arith.extui %10 : i1 to i32
    %c0_i32_10 = arith.constant 0 : i32
    %12 = arith.cmpi ne, %11, %c0_i32_10 : i32
    scf.if %12 {
      %c0_11 = arith.constant 0 : index
      %c0_12 = arith.constant 0 : index
      %13 = vector.load %arg7[%c0_11, %c0_12] : memref<8x256xf32, #tpu.memory_space<vmem>>, vector<8x256xf32>
      %14 = arith.addf %13, %6 : vector<8x256xf32>
      %c0_13 = arith.constant 0 : index
      %c0_14 = arith.constant 0 : index
      %15 = vector.load %arg7[%c0_13, %c0_14] : memref<8x256xf32, #tpu.memory_space<vmem>>, vector<8x256xf32>
      tpu.vector_store %arg7[%c0_13, %c0_14], %14 {strides = array<i32>} : memref<8x256xf32, #tpu.memory_space<vmem>>, vector<8x256xf32>,
    } else {
    }
    return
  }
  func.func @transform_0(%arg0: i32, %arg1: i32, %arg2: i32) -> (i32, i32) {
    %c0_i32 = arith.constant 0 : i32
    return %arg0, %arg2 : i32, i32
  }
  func.func @transform_1(%arg0: i32, %arg1: i32, %arg2: i32) -> (i32, i32) {
    %c0_i32 = arith.constant 0 : i32
    return %arg0, %arg2 : i32, i32
  }
  func.func @transform_2(%arg0: i32, %arg1: i32, %arg2: i32) -> (i32, i32) {
    %c0_i32 = arith.constant 0 : i32
    return %arg2, %arg1 : i32, i32
  }
  func.func @transform_3(%arg0: i32, %arg1: i32, %arg2: i32) -> (i32, i32) {
    %c0_i32 = arith.constant 0 : i32
    return %arg2, %arg1 : i32, i32
  }
  func.func @transform_4(%arg0: i32, %arg1: i32, %arg2: i32) -> (i32, i32) {
    %c0_i32 = arith.constant 0 : i32
    return %arg0, %arg1 : i32, i32
  }
}

</mosaic_0001>

<bundles_post_ra>
// kernel: custom-call.1
= control target key start
LH: loop header
LB: loop body
LE: loop exit
PB: predicated region body
PF: predicated region fallthrough
CT: control target
= control target key end

     0   :  { %s59_s0 = inlined_call_operand.hbm [shape: c64[2,8,32], index: 0, kind: input, shape index: {}]   ;;  %s60_s1 = inlined_call_operand.vmem [shape: f32[2,8,32], index: 1, kind: output, shape index: {}]  }
   0x1   :  { %s2_s8 = scalar_lea.hbm %s59_s0, 256 }
   0x2   :  { %3 = vsyncpa [#allocation0], 0  ;;  %s4_s11 = sshll.u32 %s60_s1, 4  ;;  %s34_s14 = scalar_lea.hbm %s59_s0, 512  ;;  %s5_s11 = int_to_ptr.vmem [resolvable:$true] %s4_s11 }
   0x3   :  { %p11_p0 = scmp.ne.s32.totalorder %s2_s8, %s34_s14  ;;  %p13_p1 = scmp.lt.u32.totalorder %s2_s8, %s59_s0 }
   0x4   :  { %p14_p2 = scmp.lt.u32.totalorder %s34_s14, %s34_s14  ;;  %p16_p4 = scmp.lt.u32.totalorder %s34_s14, %s2_s8 }
   0x6   :  { %p15_p3 = por %p14_p2, %p13_p1 }
   0x8   :  { %p17_p5 = por %p16_p4, %p15_p3 }
   0xa   :  { %p18_p6 = pnand %p17_p5, %p11_p0 }
   0xc   :  { %21 = shalt.err (!%p18_p6)  }
   0xd   :  { %s22_s17 = scalar_lea.vmem %s5_s11, 256  ;;  %p27_p8 = scmp.lt.s32.totalorder %s5_s11, %s5_s11 }
   0xe   :  { %p23_p7 = scmp.ne.s32.totalorder %s5_s11, %s22_s17  ;;  %p28_p9 = scmp.lt.s32.totalorder %s22_s17, %s22_s17 }
  0x10   :  { %p29_p10 = por %p28_p9, %p27_p8 }
  0x12   :  { %p30_p11 = pnand %p29_p10, %p23_p7 }
  0x14   :  { %33 = shalt.err (!%p30_p11)  }
  0x15   :  { %7 = dma.hbm_to_vmem [thread:$0]  %s2_s8, 256, %s5_s11, [#allocation0] }
  0x16   :  { %35 = dma.done.wait [#allocation0], 256  }
  0x17   :  { %36 = vsyncadd [#allocation0], 4294967040 }
  0x18   :  { %9 = vsyncpa [#allocation0], 1 }

// kernel: custom-call
= control target key start
LH: loop header
LB: loop body
LE: loop exit
PB: predicated region body
PF: predicated region fallthrough
CT: control target
= control target key end

     0   :  { %2 = vsyncpa [#allocation0], 0  ;;  %s61_s0 = inlined_call_operand.hbm [shape: c64[2,8,32], index: 0, kind: input, shape index: {}]   ;;  %s62_s1 = inlined_call_operand.vmem [shape: f32[2,8,32], index: 1, kind: output, shape index: {}]  }
   0x1   :  { %s3_s8 = sshll.u32 %s62_s1, 4  ;;  %s9_s11 = scalar_lea.hbm %s61_s0, 256  ;;  %s4_s8 = int_to_ptr.vmem [resolvable:$true] %s3_s8 }
   0x2   :  { %p10_p0 = scmp.ne.s32.totalorder %s61_s0, %s9_s11  ;;  %s11_s16 = scalar_lea.hbm %s61_s0, 512 }
   0x3   :  { %p12_p1 = scmp.lt.u32.totalorder %s11_s16, %s9_s11  ;;  %p13_p2 = scmp.lt.u32.totalorder %s9_s11, %s61_s0 }
   0x5   :  { %p14_p3 = por %p13_p2, %p12_p1 }
   0x7   :  { %p15_p4 = pnand %p14_p3, %p10_p0 }
   0x9   :  { %18 = shalt.err (!%p15_p4)  }
   0xa   :  { %s19_s1 = scalar_lea.vmem %s4_s8, 256  ;;  %p24_p6 = scmp.lt.s32.totalorder %s4_s8, %s4_s8 }
   0xb   :  { %p20_p5 = scmp.ne.s32.totalorder %s4_s8, %s19_s1  ;;  %p25_p7 = scmp.lt.s32.totalorder %s19_s1, %s19_s1 }
   0xd   :  { %p26_p8 = por %p25_p7, %p24_p6 }
   0xf   :  { %p27_p9 = pnand %p26_p8, %p20_p5 }
  0x11   :  { %30 = shalt.err (!%p27_p9)  }
  0x12   :  { %6 = dma.hbm_to_vmem [thread:$0]  %s61_s0, 256, %s4_s8, [#allocation0] }
  0x13   :  { %31 = dma.done.wait [#allocation0], 256  }
  0x14   :  { %32 = vsyncadd [#allocation0], 4294967040 }
  0x15   :  { %8 = vsyncpa [#allocation0], 1 }

// kernel: custom-call.2
= control target key start
LH: loop header
LB: loop body
LE: loop exit
PB: predicated region body
PF: predicated region fallthrough
CT: control target
= control target key end

     0   :  { %s126_s0 = inlined_call_operand.vmem [shape: f32[2,8,16], index: 0, kind: input, shape index: {}]   ;;  %s127_s1 = inlined_call_operand.vmem [shape: f32[2,8,16], index: 1, kind: input, shape index: {}]   ;;  %s128_s2 = inlined_call_operand.hbm [shape: c64[2,8,16], index: 2, kind: output, shape index: {}]  }
   0x1   :  { %s87_s11 = scalar_lea.hbm %s128_s2, 256 }
   0x2   :  { %4 = vsyncpa [#allocation0], 0  ;;  %s5_s14 = sshll.u32 %s126_s0, 4  ;;  %s6_s14 = int_to_ptr.vmem [resolvable:$true] %s5_s14 }
   0x3   :  { %s18_s15 = scalar_lea.vmem %s6_s14, 256  ;;  %p23_p1 = scmp.lt.s32.totalorder %s6_s14, %s6_s14 }
   0x4   :  { %p19_p0 = scmp.ne.s32.totalorder %s6_s14, %s18_s15  ;;  %p24_p2 = scmp.lt.s32.totalorder %s18_s15, %s18_s15 }
   0x6   :  { %p25_p3 = por %p24_p2, %p23_p1 }
   0x8   :  { %p26_p4 = pnand %p25_p3, %p19_p0 }
   0xa   :  { %29 = shalt.err (!%p26_p4)  }
   0xb   :  { %p31_p5 = scmp.ne.s32.totalorder %s128_s2, %s87_s11  ;;  %s32_s0 = scalar_lea.hbm %s128_s2, 512 }
   0xc   :  { %p33_p6 = scmp.lt.u32.totalorder %s32_s0, %s87_s11  ;;  %p34_p7 = scmp.lt.u32.totalorder %s87_s11, %s128_s2 }
   0xe   :  { %p35_p8 = por %p34_p7, %p33_p6 }
  0x10   :  { %p36_p9 = pnand %p35_p8, %p31_p5 }
  0x12   :  { %39 = shalt.err (!%p36_p9)  }
  0x13   :  { %8 = dma.vmem_to_hbm [thread:$0]  %s6_s14, 256, %s128_s2, [#allocation0] }
  0x14   :  { %65 = dma.done.wait [#allocation0], 256  }
  0x15   :  { %66 = vsyncadd [#allocation0], 4294967040 }
  0x16   :  { %10 = vsyncpa [#allocation0], 1 }
  0x17   :  { %11 = vsyncpa [#allocation1], 0  ;;  %s12_s28 = sshll.u32 %s127_s1, 4  ;;  %s13_s28 = int_to_ptr.vmem [resolvable:$true] %s12_s28 }
  0x18   :  { %s40_s29 = scalar_lea.vmem %s13_s28, 256  ;;  %p45_p11 = scmp.lt.s32.totalorder %s13_s28, %s13_s28 }
  0x19   :  { %p41_p10 = scmp.ne.s32.totalorder %s13_s28, %s40_s29  ;;  %p46_p12 = scmp.lt.s32.totalorder %s40_s29, %s40_s29 }
  0x1b   :  { %p47_p13 = por %p46_p12, %p45_p11 }
  0x1d   :  { %p48_p0 = pnand %p47_p13, %p41_p10 }
  0x1f   :  { %51 = shalt.err (!%p48_p0)  }
  0x20   :  { %p53_p1 = scmp.ne.s32.totalorder %s87_s11, %s32_s0  ;;  %p56_p2 = scmp.lt.u32.totalorder %s32_s0, %s32_s0 }
  0x22   :  { %p57_p3 = por %p56_p2, %p34_p7 }
  0x24   :  { %p59_p4 = por %p57_p3, %p33_p6 }
  0x26   :  { %p60_p5 = pnand %p59_p4, %p53_p1 }
  0x28   :  { %63 = shalt.err (!%p60_p5)  }
  0x29   :  { %15 = dma.vmem_to_hbm [thread:$0]  %s13_s28, 256, %s87_s11, [#allocation1] }
  0x2a   :  { %67 = dma.done.wait [#allocation1], 256  }
  0x2b   :  { %68 = vsyncadd [#allocation1], 4294967040 }
  0x2c   :  { %17 = vsyncpa [#allocation1], 1 }

// kernel: complex_linear_fused.1
= control target key start
LH: loop header
LB: loop body
LE: loop exit
PB: predicated region body
PF: predicated region fallthrough
CT: control target
= control target key end

     0   :  { %9 = vsyncpa [#allocation3], 0  ;;  %s1052_s0 = inlined_call_operand.vmem [shape: f32[16,128], index: 0, kind: input, shape index: {}]   ;;  %s1053_s1 = inlined_call_operand.vmem [shape: f32[16,128], index: 1, kind: input, shape index: {}]   ;;  %s1054_s2 = inlined_call_operand.hbm [shape: f32[128,256], index: 2, kind: input, shape index: {}]   ;;  %s1055_s3 = inlined_call_operand.hbm [shape: f32[128,256], index: 3, kind: input, shape index: {}]   ;;  %s1056_s4 = inlined_call_operand.vmem [shape: f32[16,256], index: 4, kind: output, shape index: {}]  }
   0x1   :  { %10 = vsyncpa [#allocation5], 0  ;;  %s930_s15 = smov 0   ;;  %s932_s16 = smov 0  }
   0x2   :  { %s934_s17 = smov 0  }
   0x3 LB: > { %s682_s18 = sadd.s32 4294967295, %s898_s17   ;;  %s35_s19 = sadd.s32 1, %s894_s16  ;;  %s898_s17 = sphi %s934_s17, %s16_s17   ;;  %s894_s16 = sphi %s932_s16, %s1066_s16   ;;  %s890_s15 = sphi %s930_s15, %s1065_s15  }
   0x4   : > { %p37_p0 = scmp.ge.s32.totalorder %s35_s19, 2  ;;  %p684_p1 = scmp.ge.s32.totalorder %s898_s17, 1 }
   0x5   : > { %p180_p2 = scmp.lt.s32.totalorder %s898_s17, 3  ;;  %p955_p4 = scmp.eq.s32.totalorder %s682_s18, 0 }
   0x6   : > { %s1068_s19 = smov (%p37_p0, %s35_s19), 0  ;;  %s900_s22 = smov [#allocation2]  }
   0x7   : > { %p951_p3 = pnand %p684_p1, %p180_p2  ;;  %s198_s23 = sshll.u32 %s900_s22, 4  ;;  %s199_s23 = int_to_ptr.vmem [resolvable:$true] %s198_s23 }
   0x8   : > { %s1061_s21 = scalar_select %p955_p4, 1, 0 }
   0x9   : > { %s1060_s20 = scalar_select %p951_p3, 1, 0 }
   0xa   : > { %p772_p5 = pneg %p951_p3  ;;  %s901_s25 = smov [#allocation4]  }
   0xb   : > { %s217_s26 = sshll.u32 %s901_s25, 4  ;;  %s812_s29 = scalar_lea.hbm %s1054_s2, 4096  ;;  %s967_s26 = int_to_ptr.vmem [resolvable:$true] %s217_s26 }
   0xc   : > { %p963_p6 = pnand %p955_p4, %p772_p5  ;;  %p813_p7 = scmp.ne.s32.totalorder %s1054_s2, %s812_s29 }
   0xd   : > { %p819_p11 = scmp.lt.u32.totalorder %s812_s29, %s1054_s2 }
   0xe   : > { %p814_p8 = pneg %p963_p6 }
  0x10   : > { %p815_p9 = pnand %p814_p8, %p813_p7 }
  0x12   : > { %p816_p10 = pneg %p815_p9 }
  0x14   : > { %p821_p12 = pnand %p819_p11, %p816_p10 }
  0x16   : > { %824 = shalt.err (!%p821_p12)
}
  0x17   : > { %s825_s8 = scalar_lea.vmem %s199_s23, 4096  ;;  %p833_p2 = scmp.lt.s32.totalorder %s199_s23, %s199_s23 }
  0x18   : > { %p826_p13 = scmp.ne.s32.totalorder %s199_s23, %s825_s8  ;;  %p834_p5 = scmp.lt.s32.totalorder %s825_s8, %s825_s8 }
  0x1a   : > { %p828_p0 = pnand %p826_p13, %p814_p8  ;;  %p835_p4 = por %p834_p5, %p833_p2 }
  0x1c   : > { %p829_p1 = pneg %p828_p0 }
  0x1e   : > { %p836_p3 = pnand %p835_p4, %p829_p1 }
  0x20   : > { %839 = shalt.err (!%p836_p3)
}
  0x21   : > { %s902_s9 = smov 256   ;;  %s903_s10 = smov 16  }
  0x22   : > { %775 = dma.hbm_to_vmem [thread:$0]  (!%p963_p6), %s1054_s2, 4096, %s199_s23, [#allocation3], %s902_s9, %s902_s9, %s903_s10  }
  0x23   : > { %s840_s18 = scalar_lea.hbm %s1055_s3, 4096 }
  0x24   : > { %p841_p7 = scmp.ne.s32.totalorder %s1055_s3, %s840_s18  ;;  %p847_p9 = scmp.lt.u32.totalorder %s840_s18, %s1055_s3 }
  0x26   : > { %p843_p3 = pnand %p841_p7, %p814_p8 }
  0x28   : > { %p844_p4 = pneg %p843_p3 }
  0x2a   : > { %p849_p10 = pnand %p847_p9, %p844_p4 }
  0x2c   : > { %852 = shalt.err (!%p849_p10)
}
  0x2d   : > { %s853_s23 = scalar_lea.vmem %s967_s26, 4096  ;;  %p861_p0 = scmp.lt.s32.totalorder %s967_s26, %s967_s26 }
  0x2e   : > { %p854_p11 = scmp.ne.s32.totalorder %s967_s26, %s853_s23  ;;  %p862_p1 = scmp.lt.s32.totalorder %s853_s23, %s853_s23 }
  0x30   : > { %p856_p12 = pnand %p854_p11, %p814_p8  ;;  %p863_p2 = por %p862_p1, %p861_p0 }
  0x32   : > { %p857_p13 = pneg %p856_p12 }
  0x34   : > { %p864_p5 = pnand %p863_p2, %p857_p13 }
  0x36   : > { %867 = shalt.err (!%p864_p5)
}
  0x37   : > { %778 = dma.hbm_to_vmem [thread:$0]  (!%p963_p6), %s1055_s3, 4096, %s967_s26, [#allocation5], %s902_s9, %s902_s9, %s903_s10  }
  0x38   : > { %p1063_p7 = scmp.ne.s32.totalorder %s1060_s20, 0 }
  0x39   : > { %p1064_p3 = scmp.ne.s32.totalorder (!%p1063_p7), %s1061_s21, 0 }
  0x3a   : > { %253 = sbr.rel (%p1063_p7) target bundleno = 321 (0x141), region = 36 }
  0x41   : > { %881 = dma.done.wait (%p1064_p3), [#allocation3], 4096  }
  0x42   : > { %883 = vsyncadd (%p1064_p3), [#allocation3], 4294963200 }
  0x43   : > { %885 = dma.done.wait (%p1064_p3), [#allocation5], 4096  }
  0x44   : > { %887 = vsyncadd (%p1064_p3), [#allocation5], 4294963200  ;;  %v904_v0 = vmov 0.0   ;;  %v359_v1 = vld [vmem:[#allocation4 + $0x8] sm:$0xff]  ;;  %v361_v2 = vld [vmem:[#allocation4 + $0x18] sm:$0xff]  ;;  %p296_p6 = scmp.lt.s32.totalorder %s890_s15, 1 }
  0x45   : > { %454 = vmatprep.mubr.f32.mxu1 %v904_v0  ;;  %525 = vmatprep.mubr.f32.mxu0 %v904_v0  ;;  %v326_v3 = vld [vmem:[#allocation2 + $0x8] sm:$0xff]  ;;  %v698_v4 = vpack.c.bf16 %v361_v2, %v359_v1  ;;  %v328_v5 = vld [vmem:[#allocation2 + $0x18] sm:$0xff]  ;;  %v358_v6 = vld [vmem:[#allocation4] sm:$0xff] }
  0x46   : > { %v360_v7 = vld [vmem:[#allocation4 + $0x10] sm:$0xff]  ;;  %v730_v8 = vpack.c.bf16 %v328_v5, %v326_v3  ;;  %v325_v10 = vld [vmem:[#allocation2] sm:$0xff]  ;;  %v363_v12 = vld [vmem:[#allocation4 + $0x28] sm:$0xff]  ;;  %s1070_s15 = smov (!%p296_p6, %s890_s15), 1 }
  0x47   : > { %v700_v9 = vpack.c.bf16 %v360_v7, %v358_v6  ;;  %v327_v11 = vld [vmem:[#allocation2 + $0x10] sm:$0xff]  ;;  %699 = vmatprep.subr.bf16.mxu1 %v698_v4  ;;  %v365_v14 = vld [vmem:[#allocation4 + $0x38] sm:$0xff]  ;;  %v330_v15 = vld [vmem:[#allocation2 + $0x28] sm:$0xff]  ;;  %s691_s20 = sshll.u32 %s1070_s15, 3  ;;  %s697_s8 = sshll.u32 %s1070_s15, 4 }
  0x48   : > { %v732_v13 = vpack.c.bf16 %v327_v11, %v325_v10  ;;  %v332_v16 = vld [vmem:[#allocation2 + $0x38] sm:$0xff]  ;;  %731 = vmatprep.subr.bf16.mxu0 %v730_v8  ;;  %v702_v17 = vpack.c.bf16 %v365_v14, %v363_v12  ;;  %v362_v19 = vld [vmem:[#allocation4 + $0x20] sm:$0xff]  ;;  %v364_v20 = vld [vmem:[#allocation4 + $0x30] sm:$0xff]  ;;  %s309_s26 = scalar_lea.vmem %s1053_s1, %s691_s20  ;;  %s302_s7 = scalar_lea.vmem %s1052_s0, %s691_s20 }
  0x49   : > { %701 = vmatpush1.bf16.msra.mxu1 %v700_v9  ;;  %v734_v18 = vpack.c.bf16 %v332_v16, %v330_v15  ;;  %v329_v21 = vld [vmem:[#allocation2 + $0x20] sm:$0xff]  ;;  %v704_v22 = vpack.c.bf16 %v364_v20, %v362_v19  ;;  %v331_v23 = vld [vmem:[#allocation2 + $0x30] sm:$0xff]  ;;  %v367_v24 = vld [vmem:[#allocation4 + $0x48] sm:$0xff]  ;;  %s322_s11 = scalar_lea.vmem %s1056_s4, %s697_s8 }
  0x4a   : > { %733 = vmatpush1.bf16.msra.mxu0 %v732_v13  ;;  %v369_v25 = vld [vmem:[#allocation4 + $0x58] sm:$0xff]  ;;  %703 = vmatprep.subr.bf16.mxu1 %v702_v17  ;;  %v736_v26 = vpack.c.bf16 %v331_v23, %v329_v21  ;;  %v334_v28 = vld [vmem:[#allocation2 + $0x48] sm:$0xff]  ;;  %v366_v30 = vld [vmem:[#allocation4 + $0x40] sm:$0xff] }
  0x4b   : > { %735 = vmatprep.subr.bf16.mxu0 %v734_v18  ;;  %v706_v27 = vpack.c.bf16 %v369_v25, %v367_v24  ;;  %v336_v29 = vld [vmem:[#allocation2 + $0x58] sm:$0xff]  ;;  %v368_v32 = vld [vmem:[#allocation4 + $0x50] sm:$0xff]  ;;  %v333_v33 = vld [vmem:[#allocation2 + $0x40] sm:$0xff] }
  0x4c   : > { %v738_v31 = vpack.c.bf16 %v336_v29, %v334_v28  ;;  %v335_v34 = vld [vmem:[#allocation2 + $0x50] sm:$0xff]  ;;  %v708_v35 = vpack.c.bf16 %v368_v32, %v366_v30  ;;  %v371_v36 = vld [vmem:[#allocation4 + $0x68] sm:$0xff]  ;;  %v373_v37 = vld [vmem:[#allocation4 + $0x78] sm:$0xff] }
  0x4d   : > { %705 = vmatpush1.bf16.msra.mxu1 %v704_v22  ;;  %v338_v38 = vld [vmem:[#allocation2 + $0x68] sm:$0xff]  ;;  %v740_v39 = vpack.c.bf16 %v335_v34, %v333_v33  ;;  %v710_v40 = vpack.c.bf16 %v373_v37, %v371_v36  ;;  %v340_v41 = vld [vmem:[#allocation2 + $0x78] sm:$0xff]  ;;  %v370_v42 = vld [vmem:[#allocation4 + $0x60] sm:$0xff] }
  0x4e   : > { %737 = vmatpush1.bf16.msra.mxu0 %v736_v26  ;;  %707 = vmatprep.subr.bf16.mxu1 %v706_v27  ;;  %v372_v43 = vld [vmem:[#allocation4 + $0x70] sm:$0xff]  ;;  %v742_v44 = vpack.c.bf16 %v340_v41, %v338_v38  ;;  %v337_v45 = vld [vmem:[#allocation2 + $0x60] sm:$0xff]  ;;  %v375_v47 = vld [vmem:[#allocation4 + $0x88] sm:$0xff] }
  0x4f   : > { %739 = vmatprep.subr.bf16.mxu0 %v738_v31  ;;  %v339_v46 = vld [vmem:[#allocation2 + $0x70] sm:$0xff]  ;;  %v377_v48 = vld [vmem:[#allocation4 + $0x98] sm:$0xff]  ;;  %v342_v49 = vld [vmem:[#allocation2 + $0x88] sm:$0xff]  ;;  %v712_v51 = vpack.c.bf16 %v372_v43, %v370_v42 }
  0x50   : > { %v344_v50 = vld [vmem:[#allocation2 + $0x98] sm:$0xff]  ;;  %v744_v52 = vpack.c.bf16 %v339_v46, %v337_v45  ;;  %v714_v53 = vpack.c.bf16 %v377_v48, %v375_v47  ;;  %v374_v54 = vld [vmem:[#allocation4 + $0x80] sm:$0xff]  ;;  %v376_v55 = vld [vmem:[#allocation4 + $0x90] sm:$0xff] }
  0x51   : > { %709 = vmatpush1.bf16.msra.mxu1 %v708_v35  ;;  %v341_v56 = vld [vmem:[#allocation2 + $0x80] sm:$0xff]  ;;  %v746_v57 = vpack.c.bf16 %v344_v50, %v342_v49  ;;  %v343_v58 = vld [vmem:[#allocation2 + $0x90] sm:$0xff]  ;;  %v379_v59 = vld [vmem:[#allocation4 + $0xa8] sm:$0xff]  ;;  %v716_v63 = vpack.c.bf16 %v376_v55, %v374_v54 }
  0x52   : > { %741 = vmatpush1.bf16.msra.mxu0 %v740_v39  ;;  %711 = vmatprep.subr.bf16.mxu1 %v710_v40  ;;  %v381_v60 = vld [vmem:[#allocation4 + $0xb8] sm:$0xff]  ;;  %v346_v61 = vld [vmem:[#allocation2 + $0xa8] sm:$0xff]  ;;  %v748_v0 = vpack.c.bf16 %v343_v58, %v341_v56  ;;  %v378_v2 = vld [vmem:[#allocation4 + $0xa0] sm:$0xff] }
  0x53   : > { %743 = vmatprep.subr.bf16.mxu0 %v742_v44  ;;  %v348_v62 = vld [vmem:[#allocation2 + $0xb8] sm:$0xff]  ;;  %v718_v1 = vpack.c.bf16 %v381_v60, %v379_v59  ;;  %v380_v3 = vld [vmem:[#allocation4 + $0xb0] sm:$0xff]  ;;  %v345_v4 = vld [vmem:[#allocation2 + $0xa0] sm:$0xff] }
  0x54   : > { %v750_v5 = vpack.c.bf16 %v348_v62, %v346_v61  ;;  %v347_v6 = vld [vmem:[#allocation2 + $0xb0] sm:$0xff]  ;;  %v383_v7 = vld [vmem:[#allocation4 + $0xc8] sm:$0xff]  ;;  %v385_v8 = vld [vmem:[#allocation4 + $0xd8] sm:$0xff]  ;;  %v720_v11 = vpack.c.bf16 %v380_v3, %v378_v2 }
  0x55   : > { %713 = vmatpush1.bf16.msra.mxu1 %v712_v51  ;;  %v350_v9 = vld [vmem:[#allocation2 + $0xc8] sm:$0xff]  ;;  %v352_v10 = vld [vmem:[#allocation2 + $0xd8] sm:$0xff]  ;;  %v752_v12 = vpack.c.bf16 %v347_v6, %v345_v4  ;;  %v722_v13 = vpack.c.bf16 %v385_v8, %v383_v7  ;;  %v382_v14 = vld [vmem:[#allocation4 + $0xc0] sm:$0xff] }
  0x56   : > { %745 = vmatpush1.bf16.msra.mxu0 %v744_v52  ;;  %715 = vmatprep.subr.bf16.mxu1 %v714_v53  ;;  %v384_v15 = vld [vmem:[#allocation4 + $0xd0] sm:$0xff]  ;;  %v349_v16 = vld [vmem:[#allocation2 + $0xc0] sm:$0xff]  ;;  %v754_v17 = vpack.c.bf16 %v352_v10, %v350_v9  ;;  %v387_v19 = vld [vmem:[#allocation4 + $0xe8] sm:$0xff] }
  0x57   : > { %747 = vmatprep.subr.bf16.mxu0 %v746_v57  ;;  %v351_v18 = vld [vmem:[#allocation2 + $0xd0] sm:$0xff]  ;;  %v389_v20 = vld [vmem:[#allocation4 + $0xf8] sm:$0xff]  ;;  %v354_v21 = vld [vmem:[#allocation2 + $0xe8] sm:$0xff]  ;;  %v724_v23 = vpack.c.bf16 %v384_v15, %v382_v14 }
  0x58   : > { %v356_v22 = vld [vmem:[#allocation2 + $0xf8] sm:$0xff]  ;;  %v756_v24 = vpack.c.bf16 %v351_v18, %v349_v16  ;;  %v726_v25 = vpack.c.bf16 %v389_v20, %v387_v19  ;;  %v386_v26 = vld [vmem:[#allocation4 + $0xe0] sm:$0xff]  ;;  %v388_v27 = vld [vmem:[#allocation4 + $0xf0] sm:$0xff] }
  0x59   : > { %717 = vmatpush1.bf16.msra.mxu1 %v716_v63  ;;  %v758_v28 = vpack.c.bf16 %v356_v22, %v354_v21  ;;  %v353_v29 = vld [vmem:[#allocation2 + $0xe0] sm:$0xff]  ;;  %v355_v30 = vld [vmem:[#allocation2 + $0xf0] sm:$0xff]  ;;  %v728_v31 = vpack.c.bf16 %v388_v27, %v386_v26 }
  0x5a   : > { %749 = vmatpush1.bf16.msra.mxu0 %v748_v0  ;;  %719 = vmatprep.subr.bf16.mxu1 %v718_v1  ;;  %v760_v32 = vpack.c.bf16 %v355_v30, %v353_v29  ;;  %v357_v33 = vld [vmem:[%s309_s26] sm:$0xff] }
  0x5b   : > { %751 = vmatprep.subr.bf16.mxu0 %v750_v5  ;;  %v324_v34 = vld [vmem:[%s302_s7] sm:$0xff] }
  0x5d   : > { %721 = vmatpush1.bf16.msra.mxu1 %v720_v11 }
  0x5e   : > { %753 = vmatpush1.bf16.msra.mxu0 %v752_v12  ;;  %723 = vmatprep.subr.bf16.mxu1 %v722_v13 }
  0x5f   : > { %755 = vmatprep.subr.bf16.mxu0 %v754_v17 }
  0x61   : > { %725 = vmatpush1.bf16.msra.mxu1 %v724_v23 }
  0x62   : > { %757 = vmatpush1.bf16.msra.mxu0 %v756_v24  ;;  %727 = vmatprep.subr.bf16.mxu1 %v726_v25 }
  0x63   : > { %759 = vmatprep.subr.bf16.mxu0 %v758_v28 }
  0x65   : > { %729 = vmatpush1.bf16.msra.mxu1 %v728_v31 }
  0x66   : > { %761 = vmatpush1.bf16.msra.mxu0 %v760_v32 }
  0x68   : > { %455 = vmatmul.mubr.f32.vlgmr.msra.gmra.mrb[0].mxu1 %v357_v33 }
  0x69   : > { %526 = vmatmul.mubr.f32.vlgmr.msra.gmra.mrb[0].mxu0 %v324_v34 }
 0x13b   : > { %v456_v35 = vpop.f32.mrb[0].mxu1 }
 0x13c   : > { %v527_v36 = vpop.f32.mrb[0].mxu0  ;;  %v458_v37 = vpop.f32.mrb[1].mxu1 }
 0x13d   : > { %v528_v38 = vadd.f32 %v527_v36, %v456_v35  ;;  %v529_v39 = vpop.f32.mrb[1].mxu0 }
 0x13e   : > { %v530_v40 = vadd.f32 %v529_v39, %v458_v37 }
 0x13f   : > { %536 = vst [vmem:[%s322_s11] sm:$0xff] %v528_v38 }
 0x140   : > { %537 = vst [vmem:[%s322_s11 + $0x8] sm:$0xff] %v530_v40 }
 0x141 PF: > { %s16_s17 = sadd.s32 1, %s898_s17   ;;  %s1065_s15 = smov %s894_s16 }
 0x142   : > { %p13_p8 = scmp.ge.s32.totalorder %s16_s17, 4   ;;  %s1066_s16 = smov %s1068_s19 }
 0x144   :  { %15 = sbr.rel (!%p13_p8) target bundleno = 3 (0x3), region = 88 }
 0x14b   :  { %578 = vsyncpa [#allocation3], 1 }
 0x14c   :  { %580 = vsyncpa [#allocation3 + $0x1], 1 }
 0x14d   :  { %581 = vsyncpa [#allocation5], 1 }

</bundles_post_ra>
